<compile_context>
chip_gen: v7x
topology: tpu7x:2x2x1
jax: 0.10.0
libtpu: 0.0.40
codegen_flags: <defaults>
</compile_context>

<pallas_src>
import functools

import jax
import jax.numpy as jnp
from jax.experimental import pallas as pl
from jax.experimental.pallas import tpu as pltpu


def _round_up(x, m):
    return ((x + m - 1) // m) * m


def _spectral_matmul_kernel(x_ref, w_ref, o_ref):
    # One MXU matmul per (row-tile, lane-tile) grid point; covers every
    # retained Fourier mode (real & imag parts) at once.
    o_ref[...] = jnp.dot(x_ref[...], w_ref[...],
                         preferred_element_type=jnp.float32)


def _spectral_matmul(x_pack, w_full, tm, tn):
    """x_pack: (BH_pad, K), w_full: (K, N_pad) -> (BH_pad, N_pad) f32."""
    bh_pad, k = x_pack.shape
    _, n_pad = w_full.shape
    grid = (bh_pad // tm, n_pad // tn)
    return pl.pallas_call(
        _spectral_matmul_kernel,
        out_shape=jax.ShapeDtypeStruct((bh_pad, n_pad), jnp.float32),
        grid_spec=pltpu.PrefetchScalarGridSpec(
            num_scalar_prefetch=0,
            grid=grid,
            in_specs=[
                pl.BlockSpec((tm, k), lambda i, j: (i, 0)),
                pl.BlockSpec((k, tn), lambda i, j: (0, j)),
            ],
            out_specs=pl.BlockSpec((tm, tn), lambda i, j: (i, j)),
        ),
        compiler_params=pltpu.CompilerParams(
            dimension_semantics=("parallel", "parallel")),
    )(x_pack, w_full)


@functools.partial(jax.jit, static_argnames=("modes2", "out_channels"))
def spectral_conv1d_forward(x, weights_r, weights_i, *, modes2, out_channels):
    """Forward pass of SpectralConv1d (mode_type=0, modes1 <= 1000 path).

    x:         (B, H, E, N) float32
    weights_r: (E, O, M)    float32  (real part of complex weights)
    weights_i: (E, O, M)    float32  (imag part of complex weights)
    returns    (B, H, O, N) float32
    """
    B, H, E, N = x.shape
    O = out_channels
    M = modes2
    BH = B * H
    K = 2 * E * M          # packed contraction length
    n_cols = 2 * O * M     # packed output width (before lane padding)

    # ---- rFFT along the last axis (glue, plain JAX). -----------------------
    x_ft = jnp.fft.rfft(x, axis=-1)                   # (B, H, E, N//2+1) c64
    a = x_ft[..., :M]                                 # (B, H, E, M)

    # ---- Pack input slab: (BH, 2E*M), cols = (re/im, e, m). No transpose. --
    ar = jnp.real(a).astype(jnp.float32)              # (B, H, E, M)
    ai = jnp.imag(a).astype(jnp.float32)              # (B, H, E, M)
    x_pack = jnp.concatenate([ar, ai], axis=2).reshape(BH, K)

    # ---- Tiling: rows (sublanes) and output lanes. --------------------------
    if BH <= 256:
        bh_pad = _round_up(BH, 8)
        tm = bh_pad
    else:
        tm = 256
        bh_pad = _round_up(BH, tm)
    if bh_pad != BH:
        x_pack = jnp.pad(x_pack, ((0, bh_pad - BH), (0, 0)))

    if n_cols <= 512:
        n_pad = max(128, _round_up(n_cols, 128))
        tn = n_pad
    else:
        tn = 512
        n_pad = _round_up(n_cols, tn)

    # ---- Packed block-diagonal weight, cols = (re/im, o, m). ----------------
    # Per mode the 2x2 real/imag block is [[wr, wi], [-wi, wr]].
    wrT = jnp.transpose(weights_r, (0, 2, 1)).astype(jnp.float32)   # (E, M, O)
    wiT = jnp.transpose(weights_i, (0, 2, 1)).astype(jnp.float32)   # (E, M, O)
    top = jnp.concatenate([wrT, wiT], axis=2)                       # (E, M, 2O)
    bot = jnp.concatenate([-wiT, wrT], axis=2)                      # (E, M, 2O)
    w3 = jnp.concatenate([top, bot], axis=0)                        # (2E, M, 2O)
    eye = jnp.eye(M, dtype=jnp.float32)
    w_full = (w3[:, :, :, None] * eye[None, :, None, :]).reshape(K, n_cols)
    if n_pad != n_cols:
        w_full = jnp.pad(w_full, ((0, 0), (0, n_pad - n_cols)))

    # ---- Pallas kernel: grid-tiled MXU matmul for the whole spectral layer.
    out_pack = _spectral_matmul(x_pack, w_full, tm, tn)             # (bh_pad, n_pad)

    # ---- Unpack: cols (re/im, o, m) -> complex (B, H, O, M). No transpose. --
    out_pack = out_pack[:BH, :n_cols].reshape(B, H, 2, O, M)
    out_low = (out_pack[:, :, 0] + 1j * out_pack[:, :, 1]).astype(jnp.complex64)

    # Zero-padded spectrum via concatenate (no full-spectrum scatter).
    tail = jnp.zeros((B, H, O, N // 2 + 1 - M), dtype=jnp.complex64)
    out_ft = jnp.concatenate([out_low, tail], axis=-1)              # (B,H,O,N//2+1)

    # ---- Inverse rFFT back to sequence domain (glue, plain JAX). -----------
    return jnp.fft.irfft(out_ft, n=N, axis=-1)                      # (B, H, O, N)


def _reference_forward(x, weights_r, weights_i, modes2, out_channels):
    """Plain-JAX reference mirroring the PyTorch forward."""
    B, H, E, N = x.shape
    x_ft = jnp.fft.rfft(x, axis=-1)
    a = x_ft[..., :modes2]
    w = (weights_r + 1j * weights_i).astype(jnp.complex64)
    out_low = jnp.einsum("bjix,iox->bjox", a, w)
    out_ft = jnp.zeros((B, H, out_channels, N // 2 + 1), dtype=jnp.complex64)
    out_ft = out_ft.at[..., :modes2].set(out_low)
    return jnp.fft.irfft(out_ft, n=N, axis=-1)


if __name__ == "__main__":
    # Module hyper-parameters (mode_type=0).
    in_channels = 4
    out_channels = 4
    seq_len = 16
    modes1 = 16
    modes2 = min(32, seq_len // 2)      # = 8, index = range(0, modes2)

    # Example input shape: (B, H, E, N) = (2, 4, in_channels, seq_len).
    B, H = 2, 4

    key = jax.random.PRNGKey(0)
    kx, kwr, kwi = jax.random.split(key, 3)

    x = jax.random.normal(kx, (B, H, in_channels, seq_len), dtype=jnp.float32)

    # weights1 = scale * rand(in, out, len(index)) complex (deterministic synth init)
    scale = 1.0 / (in_channels * out_channels)
    weights_r = scale * jax.random.uniform(
        kwr, (in_channels, out_channels, modes2), dtype=jnp.float32)
    weights_i = scale * jax.random.uniform(
        kwi, (in_channels, out_channels, modes2), dtype=jnp.float32)

    out = spectral_conv1d_forward(
        x, weights_r, weights_i, modes2=modes2, out_channels=out_channels)
    out = jax.block_until_ready(out)

    ref = _reference_forward(x, weights_r, weights_i, modes2, out_channels)
    assert out.shape == (B, H, out_channels, seq_len)
    assert jnp.allclose(out, ref, atol=1e-5, rtol=1e-5)

    print("KERNEL_OK")
</pallas_src>

<mosaic_0001>
module attributes {stable_mosaic.version = 11 : i64} {
  func.func @_spectral_matmul_kernel(%arg0: i32, %arg1: i32, %arg2: memref<8x64xf32, #tpu.memory_space<vmem>>, %arg3: memref<64x128xf32, #tpu.memory_space<vmem>>, %arg4: memref<8x128xf32, #tpu.memory_space<vmem>>) attributes {dimension_semantics = [#tpu.dimension_semantics<parallel>, #tpu.dimension_semantics<parallel>], iteration_bounds = array<i64: 1, 1>, scalar_prefetch = 0 : i64, scratch_operands = 0 : i64, tpu.core_type = #tpu.core_type<tc>, window_params = [{transform_indices = @transform_0, window_bounds = array<i64: 8, 64>}, {transform_indices = @transform_1, window_bounds = array<i64: 64, 128>}, {transform_indices = @transform_2, window_bounds = array<i64: 8, 128>}]} {
    %c0 = arith.constant 0 : index
    %c0_0 = arith.constant 0 : index
    %0 = vector.load %arg2[%c0, %c0_0] : memref<8x64xf32, #tpu.memory_space<vmem>>, vector<8x64xf32>
    %c0_1 = arith.constant 0 : index
    %c0_2 = arith.constant 0 : index
    %1 = vector.load %arg3[%c0_1, %c0_2] : memref<64x128xf32, #tpu.memory_space<vmem>>, vector<64x128xf32>
    %cst = arith.constant dense<0.000000e+00> : vector<8x128xf32>
    %2 = tpu.matmul %0, %1, %cst {dimension_numbers = #tpu.dot_dimension_numbers<[1], [0], [0], [1], [0, 0, 1, 1], [], []>} : vector<8x64xf32>, vector<64x128xf32>, vector<8x128xf32> -> vector<8x128xf32>
    %c0_3 = arith.constant 0 : index
    %c0_4 = arith.constant 0 : index
    %3 = vector.load %arg4[%c0_3, %c0_4] : memref<8x128xf32, #tpu.memory_space<vmem>>, vector<8x128xf32>
    tpu.vector_store %arg4[%c0_3, %c0_4], %2 {strides = array<i32>} : memref<8x128xf32, #tpu.memory_space<vmem>>, vector<8x128xf32>,
    return
  }
  func.func @transform_0(%arg0: i32, %arg1: i32) -> (i32, i32) {
    %c0_i32 = arith.constant 0 : i32
    %c0_i32_0 = arith.constant 0 : i32
    return %arg0, %c0_i32 : i32, i32
  }
  func.func @transform_1(%arg0: i32, %arg1: i32) -> (i32, i32) {
    %c0_i32 = arith.constant 0 : i32
    %c0_i32_0 = arith.constant 0 : i32
    return %c0_i32, %arg1 : i32, i32
  }
  func.func @transform_2(%arg0: i32, %arg1: i32) -> (i32, i32) {
    %c0_i32 = arith.constant 0 : i32
    return %arg0, %arg1 : i32, i32
  }
}

</mosaic_0001>

<bundles_post_ra>
// kernel: reverse.0
= control target key start
LH: loop header
LB: loop body
LE: loop exit
PB: predicated region body
PF: predicated region fallthrough
CT: control target
= control target key end

     0   :  { %v2_v0 = vlaneseq  ;;  %s340_s0 = inlined_call_operand.vmem [shape: f32[2,4,4,7], index: 0, kind: input, shape index: {}]   ;;  %s341_s1 = inlined_call_operand.vmem [shape: f32[2,4,4,7], index: 1, kind: output, shape index: {}]  }
   0x2   :  { %v3_v1 = vsub.s32 6, %v2_v0 }
   0x4   :  { %4 = vset.pattern.permute.xlu0 %v3_v1 }
   0x5   :  { %290 = vset.pattern.permute.xlu1 %v3_v1  ;;  %v24_v2 = vld [vmem:[%s340_s0 + $0x8] sm:$0xff]   ;;  %v20_v3 = vld [vmem:[%s340_s0] sm:$0xff]   ;;  %v30_v4 = vld [vmem:[%s340_s0 + $0x14] sm:$0xff]  }
   0x6   :  { %25 = vst [vmem:[#allocation1 + $0x8] sm:$0xff] %v24_v2   ;;  %21 = vst [vmem:[#allocation1] sm:$0xff] %v20_v3   ;;  %v28_v5 = vld [vmem:[%s340_s0 + $0x10] sm:$0xf]  ;;  %v34_v6 = vld [vmem:[%s340_s0 + $0x1c] sm:$0xf] }
   0x7   :  { %31 = vst [vmem:[#allocation1 + $0x14] sm:$0xff] %v30_v4   ;;  %29 = vst [vmem:[#allocation1 + $0x10] sm:$0xf] %v28_v5 }
   0x8   :  { %35 = vst [vmem:[#allocation1 + $0x1c] sm:$0xf] %v34_v6 }
   0xd   :  { %v101_v7 = vld [vmem:[#allocation1 + $0x8] sm:$0xf]  ;;  %v108_v8 = vld [vmem:[#allocation1] sm:$0xf]  ;;  %v96_v9 = vld [vmem:[#allocation1 + $0xc] sm:$0xf] }
   0xe   :  { %103 = vst [vmem:[#allocation0 + $0x10] sm:$0xf] %v101_v7  ;;  %109 = vst [vmem:[#allocation0] sm:$0xf] %v108_v8  ;;  %v105_v10 = vld [vmem:[#allocation1 + $0x4] sm:$0xf] }
   0xf   :  { %98 = vst [vmem:[#allocation0 + $0x18] sm:$0xf] %v96_v9  ;;  %v86_v11 = vld [vmem:[#allocation1 + $0x14] sm:$0xf]  ;;  %v91_v12 = vld [vmem:[#allocation1 + $0x10] sm:$0xf] }
  0x10   :  { %107 = vst [vmem:[#allocation0 + $0x8] sm:$0xf] %v105_v10  ;;  %88 = vst [vmem:[#allocation0 + $0x28] sm:$0xf] %v86_v11  ;;  %v76_v13 = vld [vmem:[#allocation1 + $0x1c] sm:$0xf] }
  0x11   :  { %93 = vst [vmem:[#allocation0 + $0x20] sm:$0xf] %v91_v12  ;;  %v81_v14 = vld [vmem:[#allocation1 + $0x18] sm:$0xf]  ;;  %78 = vst [vmem:[#allocation0 + $0x38] sm:$0xf] %v76_v13 }
  0x12   :  { %83 = vst [vmem:[#allocation0 + $0x30] sm:$0xf] %v81_v14 }
  0x15   :  { %v122_v15 = vld [vmem:[#allocation0 + $0x10] sm:$0xff]  ;;  %v110_v16 = vld [vmem:[#allocation0] sm:$0xff] }
  0x16   :  { %123 = vperm.xlu1 %290, %v122_v15   ;;  %111 = vperm.xlu0 %4, %v110_v16   ;;  %v128_v17 = vld [vmem:[#allocation0 + $0x18] sm:$0xff] }
  0x17   :  { %v116_v18 = vld [vmem:[#allocation0 + $0x8] sm:$0xff] }
  0x18   :  { %v140_v19 = vld [vmem:[#allocation0 + $0x28] sm:$0xff]  ;;  %v134_v20 = vld [vmem:[#allocation0 + $0x20] sm:$0xff]  ;;  %v152_v21 = vld [vmem:[#allocation0 + $0x38] sm:$0xff] }
  0x19   :  { %v146_v22 = vld [vmem:[#allocation0 + $0x30] sm:$0xff] }
  0x1a   :  { %129 = vperm.xlu1 %290, %v128_v17   ;;  %117 = vperm.xlu0 %4, %v116_v18  }
  0x1e   :  { %141 = vperm.xlu1 %290, %v140_v19   ;;  %135 = vperm.xlu0 %4, %v134_v20  }
  0x22   :  { %153 = vperm.xlu1 %290, %v152_v21   ;;  %147 = vperm.xlu0 %4, %v146_v22  }
  0x95   :  { %v124_v23 = vpop.permute.xlu1 %123  ;;  %v112_v24 = vpop.permute.xlu0 %111 }
  0x96   :  { %125 = vst [vmem:[#allocation2 + $0x10] sm:$0xff] %v124_v23  ;;  %113 = vst [vmem:[#allocation2] sm:$0xff] %v112_v24 }
  0x99   :  { %v130_v25 = vpop.permute.xlu1 %129  ;;  %v118_v26 = vpop.permute.xlu0 %117 }
  0x9a   :  { %131 = vst [vmem:[#allocation2 + $0x18] sm:$0xff] %v130_v25  ;;  %119 = vst [vmem:[#allocation2 + $0x8] sm:$0xff] %v118_v26 }
  0x9d   :  { %v168_v27 = vld [vmem:[#allocation2 + $0x10] sm:$0xf]  ;;  %v159_v28 = vld [vmem:[#allocation2] sm:$0xf]  ;;  %v142_v29 = vpop.permute.xlu1 %141  ;;  %v136_v30 = vpop.permute.xlu0 %135 }
  0x9e   :  { %172 = vst [vmem:[#allocation3 + $0x8] sm:$0xf] %v168_v27  ;;  %161 = vst [vmem:[#allocation3] sm:$0xf] %v159_v28 }
  0x9f   :  { %143 = vst [vmem:[#allocation2 + $0x28] sm:$0xff] %v142_v29  ;;  %137 = vst [vmem:[#allocation2 + $0x20] sm:$0xff] %v136_v30 }
  0xa1   :  { %v174_v31 = vld [vmem:[#allocation2 + $0x18] sm:$0xf]  ;;  %v163_v32 = vld [vmem:[#allocation2 + $0x8] sm:$0xf]  ;;  %v154_v33 = vpop.permute.xlu1 %153  ;;  %v148_v34 = vpop.permute.xlu0 %147 }
  0xa2   :  { %178 = vst [vmem:[#allocation3 + $0xc] sm:$0xf] %v174_v31  ;;  %166 = vst [vmem:[#allocation3 + $0x4] sm:$0xf] %v163_v32 }
  0xa3   :  { %155 = vst [vmem:[#allocation2 + $0x38] sm:$0xff] %v154_v33  ;;  %149 = vst [vmem:[#allocation2 + $0x30] sm:$0xff] %v148_v34 }
  0xa5   :  { %v222_v35 = vld [vmem:[#allocation3 + $0x8] sm:$0xf]  ;;  %v218_v36 = vld [vmem:[#allocation3] sm:$0xf] }
  0xa6   :  { %v186_v37 = vld [vmem:[#allocation2 + $0x28] sm:$0xf]  ;;  %223 = vst [vmem:[%s341_s1 + $0x8] sm:$0xf] %v222_v35  ;;  %219 = vst [vmem:[%s341_s1] sm:$0xf] %v218_v36 }
  0xa7   :  { %190 = vst [vmem:[#allocation3 + $0x14] sm:$0xf] %v186_v37  ;;  %v180_v38 = vld [vmem:[#allocation2 + $0x20] sm:$0xf] }
  0xa8   :  { %184 = vst [vmem:[#allocation3 + $0x10] sm:$0xf] %v180_v38 }
  0xa9   :  { %v224_v39 = vld [vmem:[#allocation3 + $0xc] sm:$0xf]  ;;  %v220_v40 = vld [vmem:[#allocation3 + $0x4] sm:$0xf] }
  0xaa   :  { %v198_v41 = vld [vmem:[#allocation2 + $0x38] sm:$0xf]  ;;  %225 = vst [vmem:[%s341_s1 + $0xc] sm:$0xf] %v224_v39  ;;  %221 = vst [vmem:[%s341_s1 + $0x4] sm:$0xf] %v220_v40 }
  0xab   :  { %202 = vst [vmem:[#allocation3 + $0x1c] sm:$0xf] %v198_v41  ;;  %v192_v42 = vld [vmem:[#allocation2 + $0x30] sm:$0xf] }
  0xac   :  { %196 = vst [vmem:[#allocation3 + $0x18] sm:$0xf] %v192_v42 }
  0xae   :  { %v228_v43 = vld [vmem:[#allocation3 + $0x14] sm:$0xf] }
  0xaf   :  { %229 = vst [vmem:[%s341_s1 + $0x14] sm:$0xf] %v228_v43  ;;  %v226_v44 = vld [vmem:[#allocation3 + $0x10] sm:$0xf] }
  0xb0   :  { %227 = vst [vmem:[%s341_s1 + $0x10] sm:$0xf] %v226_v44 }
  0xb2   :  { %v232_v45 = vld [vmem:[#allocation3 + $0x1c] sm:$0xf] }
  0xb3   :  { %233 = vst [vmem:[%s341_s1 + $0x1c] sm:$0xf] %v232_v45  ;;  %v230_v46 = vld [vmem:[#allocation3 + $0x18] sm:$0xf] }
  0xb4   :  { %231 = vst [vmem:[%s341_s1 + $0x18] sm:$0xf] %v230_v46 }

// kernel: spectral_conv1d_forward.1
= control target key start
LH: loop header
LB: loop body
LE: loop exit
PB: predicated region body
PF: predicated region fallthrough
CT: control target
= control target key end

     0   :  { %v143_v0 = vmov 0.0|0.0   ;;  %vm144_vm0 = vmmov 0   ;;  %v145_v4 = vmov 0.0   ;;  %vm20_vm1 = vcmask 523264   ;;  %s191_s1 = inlined_call_operand.vmem [shape: f32[64,128], index: 1, kind: input, shape index: {}]   ;;  %s192_s0 = inlined_call_operand.vmem [shape: f32[8,64], index: 0, kind: input, shape index: {}]   ;;  %s193_s2 = inlined_call_operand.vmem [shape: f32[8,128], index: 2, kind: output, shape index: {}]  }
   0x1   :  { %128 = vmatprep.subr.bf16.mxu0 %v143_v0  ;;  %v12_v1 = vld [vmem:[%s191_s1] sm:$0xff]  ;;  %v13_v2 = vld [vmem:[%s191_s1 + $0x8] sm:$0xff]  ;;  %v14_v3 = vld [vmem:[%s191_s1 + $0x10] sm:$0xff]  ;;  %125 = vmatprep.mubr.msk.f32.mxu0 %vm144_vm0, %v145_v4 }
   0x2   :  { %v129_v5 = vpack.c.bf16 %v13_v2, %v12_v1  ;;  %v15_v6 = vld [vmem:[%s191_s1 + $0x18] sm:$0xff]  ;;  %v16_v8 = vld [vmem:[%s191_s1 + $0x20] sm:$0xff]  ;;  %v17_v9 = vld [vmem:[%s191_s1 + $0x28] sm:$0xff] }
   0x3   :  { %v132_v7 = vpack.c.bf16 %v15_v6, %v14_v3  ;;  %v135_v10 = vpack.c.bf16 %v17_v9, %v16_v8  ;;  %v18_v11 = vld [vmem:[%s191_s1 + $0x30] sm:$0xff]  ;;  %v19_v12 = vld [vmem:[%s191_s1 + $0x38] sm:$0xff]  ;;  %v11_v14 = vld [vmem:[%s192_s0] sm:$0xff] }
   0x4   :  { %130 = vmatpush3.bf16.msra.mxu0 %v129_v5  ;;  %v138_v13 = vpack.c.bf16 %v19_v12, %v18_v11 }
   0x5   :  { %131 = vmatprep.subr.bf16.mxu0 %v143_v0 }
   0x8   :  { %133 = vmatpush3.bf16.msra.mxu0 %v132_v7 }
   0x9   :  { %134 = vmatprep.subr.bf16.mxu0 %v143_v0 }
   0xc   :  { %136 = vmatpush3.bf16.msra.mxu0 %v135_v10 }
   0xd   :  { %137 = vmatprep.subr.bf16.mxu0 %v143_v0 }
  0x10   :  { %139 = vmatpush3.bf16.msra.mxu0 %v138_v13 }
  0x13   :  { %126 = vmatmul.mubr.msk.f32.vlgmr.msra.gmra.mrb[0].mxu0 %vm20_vm1, %v11_v14 }
  0xe6   :  { %v90_v15 = vpop.f32.mrb[0].mxu0 }
  0xe7   :  { %94 = vst [vmem:[%s193_s2] sm:$0xff] %v90_v15  ;;  %v127_v16 = vpop.f32.mrb[1].mxu0 }

</bundles_post_ra>
